<compile_context>
chip_gen: v5e
topology: v5e:2x2
jax: 0.10.0
libtpu: 0.0.40
codegen_flags: <defaults>
</compile_context>

<pallas_src>
import numpy as np
import jax
import jax.numpy as jnp
from jax.experimental import pallas as pl
from jax.experimental.pallas import tpu as pltpu

# Head packing along the lane dimension of the fused weight / output slab:
#   genre[10] | mood[8] | energy[1] | section[6] | event[4]  -> 29 real lanes,
# zero-padded to _HEAD_PAD = 128 so the head matmul and output store are lane-dense.
_HEAD_SPEC = (
    ("genre", 10, "softmax"),
    ("mood", 8, "softmax"),
    ("energy", 1, "sigmoid"),
    ("section", 6, "softmax"),
    ("event", 4, "sigmoid"),
)
_HEAD_TOTAL = sum(s for _, s, _ in _HEAD_SPEC)   # 29
_HEAD_PAD = 128


def _recip(d):
    # EUP vrcp (approx, free slot) + one Newton step -> ~f32 accuracy, no VALU divide.
    r = pl.reciprocal(d, approx=True)
    return r * (2.0 - d * r)


def _sigmoid(z):
    # Numerically stable single-EUP-op form of 1 / (1 + exp(-z)).
    return 0.5 * (jnp.tanh(0.5 * z) + 1.0)


def music_kernel(x_ref, w1_ref, b1_ref, w2_ref, b2_ref, wh_ref, bh_ref, seg_ref, out_ref):
    mm_dtype = w1_ref.dtype  # MXU operand dtype (bf16 by default, f32 supported)

    # feature_net: Linear -> ReLU -> (Dropout=id) -> Linear -> ReLU -> (Dropout=id)
    # TODO(synk): nn.Dropout(0.2) is identity (eval mode); training-mode stochastic
    # masking is intentionally not implemented.
    x = x_ref[...].astype(mm_dtype)     # cast in-kernel: saves a wrapper HBM pass over x
    h = jnp.dot(x, w1_ref[...], preferred_element_type=jnp.float32) + b1_ref[...]
    h = jnp.maximum(h, 0.0)
    h = jnp.dot(h.astype(mm_dtype), w2_ref[...], preferred_element_type=jnp.float32) + b2_ref[...]
    h = jnp.maximum(h, 0.0)

    # All 5 heads fused into one lane-dense MXU push + one fused bias add.
    z = jnp.dot(h.astype(mm_dtype), wh_ref[...], preferred_element_type=jnp.float32) + bh_ref[...]

    # (1, 128) lane masks, broadcast into the selects below (no full-slab mask builds).
    lane = jax.lax.broadcasted_iota(jnp.int32, (1, _HEAD_PAD), 1)
    softmax_masks = []
    softmax_mask = jnp.zeros((1, _HEAD_PAD), jnp.bool_)
    sigmoid_mask = jnp.zeros((1, _HEAD_PAD), jnp.bool_)
    off = 0
    for _, size, kind in _HEAD_SPEC:
        m = (lane >= off) & (lane < off + size)
        if kind == "softmax":
            softmax_masks.append(m)
            softmax_mask = jnp.logical_or(softmax_mask, m)
        else:
            sigmoid_mask = jnp.logical_or(sigmoid_mask, m)
        off += size

    # Per-row, per-head max on softmax lanes; max(z, 0) on sigmoid/pad lanes so the
    # slab-wide exp stays in (0, 1] (no inf feeding the MXU segment-sum below).
    m_slab = jnp.maximum(z, 0.0)
    for m in softmax_masks:
        mh = jnp.max(jnp.where(m, z, -jnp.inf), axis=-1, keepdims=True)
        m_slab = jnp.where(m, mh, m_slab)

    e = jnp.exp(z - m_slab)             # single slab-wide EUP exp

    # Per-head softmax denominators via one MXU push onto a constant segment-broadcast
    # matrix (identity on sigmoid/pad lanes -> d > 0 everywhere). Replaces 3 cross-lane
    # XLU reductions + scatter selects.
    d = jnp.dot(e.astype(seg_ref.dtype), seg_ref[...], preferred_element_type=jnp.float32)

    probs = e * _recip(d)
    sig = _sigmoid(z)

    # Single lane-dense store (one unmasked writeback per tile). Pad lanes -> 0.
    out_ref[...] = jnp.where(softmax_mask, probs,
                             jnp.where(sigmoid_mask, sig, 0.0)).astype(out_ref.dtype)


def prepare_params(params, *, compute_dtype=jnp.bfloat16):
    """One-time weight preparation (call once, reuse across forwards).

    Concatenates + zero-pads the 5 head weights into one (hidden, 128) matmul,
    casts MXU operands to `compute_dtype`, keeps biases f32, and builds the
    constant (128, 128) softmax segment-broadcast matrix.
    """
    wh = jnp.concatenate(
        [params["wg"], params["wm"], params["we"], params["ws"], params["wv"]], axis=1)
    bh = jnp.concatenate(
        [params["bg"], params["bm"], params["be"], params["bs"], params["bv"]], axis=1)
    wh = jnp.pad(wh, ((0, 0), (0, _HEAD_PAD - _HEAD_TOTAL)))
    bh = jnp.pad(bh, ((0, 0), (0, _HEAD_PAD - _HEAD_TOTAL)))

    # Segment-broadcast matrix: S[j, k] = 1 iff lanes j,k are in the same softmax head;
    # identity on sigmoid/pad lanes so the denominator is strictly positive everywhere.
    seg = np.zeros((_HEAD_PAD, _HEAD_PAD), np.float32)
    off = 0
    for _, size, kind in _HEAD_SPEC:
        if kind == "softmax":
            seg[off:off + size, off:off + size] = 1.0
        off += size
    diag = np.arange(_HEAD_PAD)
    seg[diag, diag] = np.maximum(seg[diag, diag], 1.0)

    # TODO(synk): if the model config is controllable, pad hidden to a multiple of 256
    # (v6e/v7x MXU width) here, analogous to the head padding.
    return {
        "w1": params["w1"].astype(compute_dtype),
        "b1": params["b1"].astype(jnp.float32),
        "w2": params["w2"].astype(compute_dtype),
        "b2": params["b2"].astype(jnp.float32),
        "wh": wh.astype(compute_dtype),
        "bh": bh.astype(jnp.float32),
        "seg": jnp.asarray(seg, compute_dtype),
    }


def music_understanding_forward(x, prepared, *, tile_b=512, out_dtype=None):
    """x: (B, input_size). prepared: output of prepare_params().

    Returns (genre, mood, energy, section, event) probabilities (f32), matching the
    PyTorch module's forward (eval-mode dropout).
    """
    B, d_in = x.shape
    hidden = prepared["w1"].shape[1]
    compute_dtype = prepared["w1"].dtype
    if out_dtype is None:
        # bf16 slab halves the (dominant) output writeback for the fast path; keep f32
        # for the exact-precision path.
        out_dtype = jnp.bfloat16 if compute_dtype == jnp.bfloat16 else jnp.float32
    out_dtype = jnp.dtype(out_dtype)

    # Batch tiling: >= 2 grid steps whenever B > 16 so the "parallel" axis shards
    # across v7x's two TensorCores; tiles rounded to 16 rows (bf16 sublane packing);
    # ragged last block handled by Pallas partial blocks (no wrapper-side jnp.pad).
    if B <= 16:
        tb = B                                   # single full-extent block (layout-legal)
    else:
        half_rounded = ((B + 1) // 2 + 15) // 16 * 16
        tb = max(16, min(max(16, (tile_b // 16) * 16), half_rounded))
    grid = (pl.cdiv(B, tb),)

    args = (x, prepared["w1"], prepared["b1"], prepared["w2"], prepared["b2"],
            prepared["wh"], prepared["bh"], prepared["seg"])

    flops = 2 * B * (d_in * hidden + hidden * hidden + hidden * _HEAD_PAD
                     + _HEAD_PAD * _HEAD_PAD)
    transcendentals = 3 * B * _HEAD_PAD          # exp + tanh + recip, rough
    weight_bytes = sum(int(a.size) * a.dtype.itemsize for a in args[1:])
    bytes_accessed = (int(x.size) * x.dtype.itemsize + weight_bytes
                      + B * _HEAD_PAD * out_dtype.itemsize)

    # VMEM budgeting: resident weights (+ optional single-buffering), double-buffered
    # x/out tiles, headroom for f32 intermediates.
    io_bytes = 2 * tb * d_in * x.dtype.itemsize + 2 * tb * _HEAD_PAD * out_dtype.itemsize
    scratch_bytes = 6 * tb * max(hidden, _HEAD_PAD) * 4
    try:
        vmem_cap = int(pltpu.get_tpu_info().vmem_capacity_bytes)
    except Exception:
        vmem_cap = 64 << 20                      # conservative (v7x per-TC VMEM)

    def run(single_buffer_weights):
        def const_spec(shape):
            idx_map = lambda i: (0,) * len(shape)
            if single_buffer_weights:
                return pl.BlockSpec(shape, idx_map, pipeline_mode=pl.Buffered(1))
            return pl.BlockSpec(shape, idx_map)

        in_specs = [
            pl.BlockSpec((tb, d_in), lambda i: (i, 0)),   # x: streamed per batch tile
            const_spec((d_in, hidden)),                   # weights: VMEM-resident
            const_spec((1, hidden)),
            const_spec((hidden, hidden)),
            const_spec((1, hidden)),
            const_spec((hidden, _HEAD_PAD)),
            const_spec((1, _HEAD_PAD)),
            const_spec((_HEAD_PAD, _HEAD_PAD)),
        ]
        wbuf = 1 if single_buffer_weights else 2
        budget = wbuf * weight_bytes + io_bytes + scratch_bytes + (2 << 20)
        vmem_limit = int(min(max(budget, 32 << 20), max(vmem_cap - (4 << 20), 16 << 20)))

        return pl.pallas_call(
            music_kernel,
            out_shape=jax.ShapeDtypeStruct((B, _HEAD_PAD), out_dtype),
            grid=grid,
            in_specs=in_specs,
            out_specs=pl.BlockSpec((tb, _HEAD_PAD), lambda i: (i, 0)),
            compiler_params=pltpu.CompilerParams(
                dimension_semantics=("parallel",),        # v7x: both TCs share the batch grid
                vmem_limit_bytes=vmem_limit,
            ),
            cost_estimate=pl.CostEstimate(
                flops=flops, transcendentals=transcendentals,
                bytes_accessed=bytes_accessed),
        )(*args)

    try:
        slab = run(single_buffer_weights=hasattr(pl, "Buffered"))
    except Exception:
        slab = run(single_buffer_weights=False)           # fallback: default double-buffering

    slab = slab.astype(jnp.float32)
    outs = []
    off = 0
    for _, size, _ in _HEAD_SPEC:
        outs.append(slab[:, off:off + size])
        off += size
    return tuple(outs)


def init_params(key, input_size, hidden_size):
    """Deterministic synthetic parameters, (in, out) layout, biases as (1, out)."""
    ks = jax.random.split(key, 14)

    def lin(kw, kb, fan_in, fan_out):
        scale = 1.0 / jnp.sqrt(fan_in)
        w = jax.random.uniform(kw, (fan_in, fan_out), jnp.float32, -scale, scale)
        b = jax.random.uniform(kb, (1, fan_out), jnp.float32, -scale, scale)
        return w, b

    p = {}
    p["w1"], p["b1"] = lin(ks[0], ks[1], input_size, hidden_size)
    p["w2"], p["b2"] = lin(ks[2], ks[3], hidden_size, hidden_size)
    p["wg"], p["bg"] = lin(ks[4], ks[5], hidden_size, 10)
    p["wm"], p["bm"] = lin(ks[6], ks[7], hidden_size, 8)
    p["we"], p["be"] = lin(ks[8], ks[9], hidden_size, 1)
    p["ws"], p["bs"] = lin(ks[10], ks[11], hidden_size, 6)
    p["wv"], p["bv"] = lin(ks[12], ks[13], hidden_size, 4)
    return p


def reference_forward(x, p):
    """Pure-JAX f32 reference for verification."""
    h = jnp.maximum(x @ p["w1"] + p["b1"], 0.0)
    h = jnp.maximum(h @ p["w2"] + p["b2"], 0.0)
    genre = jax.nn.softmax(h @ p["wg"] + p["bg"], axis=-1)
    mood = jax.nn.softmax(h @ p["wm"] + p["bm"], axis=-1)
    energy = jax.nn.sigmoid(h @ p["we"] + p["be"])
    section = jax.nn.softmax(h @ p["ws"] + p["bs"], axis=-1)
    event = jax.nn.sigmoid(h @ p["wv"] + p["bv"])
    return genre, mood, energy, section, event


if __name__ == "__main__":
    B, INPUT_SIZE, HIDDEN = 8, 32, 32

    key = jax.random.PRNGKey(0)
    k_x, k_p = jax.random.split(key)
    x = jax.random.normal(k_x, (B, INPUT_SIZE), jnp.float32)
    params = init_params(k_p, INPUT_SIZE, HIDDEN)
    refs = reference_forward(x, params)

    # 1) f32 MXU operands + f32 slab: tight tolerance (exact-precision path).
    prep_f32 = prepare_params(params, compute_dtype=jnp.float32)
    outs_f32 = jax.block_until_ready(music_understanding_forward(x, prep_f32))
    for o, r in zip(outs_f32, refs):
        assert o.shape == r.shape, (o.shape, r.shape)
        assert jnp.allclose(o, r, atol=1e-5, rtol=1e-5), float(jnp.max(jnp.abs(o - r)))

    # 2) bf16 MXU operands + bf16 slab (default fast path): relaxed tolerance.
    prep_bf16 = prepare_params(params, compute_dtype=jnp.bfloat16)
    outs_bf16 = jax.block_until_ready(music_understanding_forward(x, prep_bf16))
    for o, r in zip(outs_bf16, refs):
        assert o.shape == r.shape, (o.shape, r.shape)
        assert jnp.allclose(o, r, atol=3e-2, rtol=3e-2), float(jnp.max(jnp.abs(o - r)))

    # 3) Ragged batch with a >= 2-step grid (exercises partial last block handling
    #    and the two-TensorCore batch split on v7x).
    B2 = 20
    x2 = jax.random.normal(jax.random.PRNGKey(1), (B2, INPUT_SIZE), jnp.float32)
    refs2 = reference_forward(x2, params)
    outs_grid = jax.block_until_ready(music_understanding_forward(x2, prep_f32))
    for o, r in zip(outs_grid, refs2):
        assert o.shape == r.shape, (o.shape, r.shape)
        assert jnp.allclose(o, r, atol=1e-5, rtol=1e-5), float(jnp.max(jnp.abs(o - r)))

    print("KERNEL_OK")
</pallas_src>

<mosaic_0001>
module attributes {stable_mosaic.version = 11 : i64} {
  func.func @music_kernel(%arg0: i32, %arg1: memref<8x32xf32, #tpu.memory_space<vmem>>, %arg2: memref<32x32xf32, #tpu.memory_space<vmem>>, %arg3: memref<1x32xf32, #tpu.memory_space<vmem>>, %arg4: memref<32x32xf32, #tpu.memory_space<vmem>>, %arg5: memref<1x32xf32, #tpu.memory_space<vmem>>, %arg6: memref<32x128xf32, #tpu.memory_space<vmem>>, %arg7: memref<1x128xf32, #tpu.memory_space<vmem>>, %arg8: memref<128x128xf32, #tpu.memory_space<vmem>>, %arg9: memref<8x128xf32, #tpu.memory_space<vmem>>) attributes {dimension_semantics = [#tpu.dimension_semantics<parallel>], iteration_bounds = array<i64: 1>, scalar_prefetch = 0 : i64, scratch_operands = 0 : i64, tpu.core_type = #tpu.core_type<tc>, window_params = [{transform_indices = @transform_0, window_bounds = array<i64: 8, 32>}, {pipeline_mode = #tpu.pipeline_mode<synchronous>, transform_indices = @transform_1, window_bounds = array<i64: 32, 32>}, {pipeline_mode = #tpu.pipeline_mode<synchronous>, transform_indices = @transform_2, window_bounds = array<i64: 1, 32>}, {pipeline_mode = #tpu.pipeline_mode<synchronous>, transform_indices = @transform_3, window_bounds = array<i64: 32, 32>}, {pipeline_mode = #tpu.pipeline_mode<synchronous>, transform_indices = @transform_4, window_bounds = array<i64: 1, 32>}, {pipeline_mode = #tpu.pipeline_mode<synchronous>, transform_indices = @transform_5, window_bounds = array<i64: 32, 128>}, {pipeline_mode = #tpu.pipeline_mode<synchronous>, transform_indices = @transform_6, window_bounds = array<i64: 1, 128>}, {pipeline_mode = #tpu.pipeline_mode<synchronous>, transform_indices = @transform_7, window_bounds = array<i64: 128, 128>}, {transform_indices = @transform_8, window_bounds = array<i64: 8, 128>}]} {
    %c0 = arith.constant 0 : index
    %c0_0 = arith.constant 0 : index
    %0 = vector.load %arg1[%c0, %c0_0] : memref<8x32xf32, #tpu.memory_space<vmem>>, vector<8x32xf32>
    %c0_1 = arith.constant 0 : index
    %c0_2 = arith.constant 0 : index
    %1 = vector.load %arg2[%c0_1, %c0_2] : memref<32x32xf32, #tpu.memory_space<vmem>>, vector<32x32xf32>
    %cst = arith.constant dense<0.000000e+00> : vector<8x32xf32>
    %2 = tpu.matmul %0, %1, %cst {dimension_numbers = #tpu.dot_dimension_numbers<[1], [0], [0], [1], [0, 0, 1, 1], [], []>} : vector<8x32xf32>, vector<32x32xf32>, vector<8x32xf32> -> vector<8x32xf32>
    %c0_3 = arith.constant 0 : index
    %c0_4 = arith.constant 0 : index
    %3 = vector.load %arg3[%c0_3, %c0_4] : memref<1x32xf32, #tpu.memory_space<vmem>>, vector<1x32xf32>
    %4 = vector.broadcast %3 : vector<1x32xf32> to vector<8x32xf32>
    %5 = arith.addf %2, %4 : vector<8x32xf32>
    %cst_5 = arith.constant 0.000000e+00 : f32
    %6 = vector.broadcast %cst_5 : f32 to vector<8x32xf32>
    %7 = arith.maximumf %5, %6 : vector<8x32xf32>
    %c0_6 = arith.constant 0 : index
    %c0_7 = arith.constant 0 : index
    %8 = vector.load %arg4[%c0_6, %c0_7] : memref<32x32xf32, #tpu.memory_space<vmem>>, vector<32x32xf32>
    %cst_8 = arith.constant dense<0.000000e+00> : vector<8x32xf32>
    %9 = tpu.matmul %7, %8, %cst_8 {dimension_numbers = #tpu.dot_dimension_numbers<[1], [0], [0], [1], [0, 0, 1, 1], [], []>} : vector<8x32xf32>, vector<32x32xf32>, vector<8x32xf32> -> vector<8x32xf32>
    %c0_9 = arith.constant 0 : index
    %c0_10 = arith.constant 0 : index
    %10 = vector.load %arg5[%c0_9, %c0_10] : memref<1x32xf32, #tpu.memory_space<vmem>>, vector<1x32xf32>
    %11 = vector.broadcast %10 : vector<1x32xf32> to vector<8x32xf32>
    %12 = arith.addf %9, %11 : vector<8x32xf32>
    %cst_11 = arith.constant 0.000000e+00 : f32
    %13 = vector.broadcast %cst_11 : f32 to vector<8x32xf32>
    %14 = arith.maximumf %12, %13 : vector<8x32xf32>
    %c0_12 = arith.constant 0 : index
    %c0_13 = arith.constant 0 : index
    %15 = vector.load %arg6[%c0_12, %c0_13] : memref<32x128xf32, #tpu.memory_space<vmem>>, vector<32x128xf32>
    %cst_14 = arith.constant dense<0.000000e+00> : vector<8x128xf32>
    %16 = tpu.matmul %14, %15, %cst_14 {dimension_numbers = #tpu.dot_dimension_numbers<[1], [0], [0], [1], [0, 0, 1, 1], [], []>} : vector<8x32xf32>, vector<32x128xf32>, vector<8x128xf32> -> vector<8x128xf32>
    %c0_15 = arith.constant 0 : index
    %c0_16 = arith.constant 0 : index
    %17 = vector.load %arg7[%c0_15, %c0_16] : memref<1x128xf32, #tpu.memory_space<vmem>>, vector<1x128xf32>
    %18 = vector.broadcast %17 : vector<1x128xf32> to vector<8x128xf32>
    %19 = arith.addf %16, %18 : vector<8x128xf32>
    %20 = tpu.iota {dimensions = array<i32: 1>} : vector<1x128xi32>
    %false = arith.constant false
    %21 = vector.broadcast %false : i1 to vector<1x128xi1>
    %false_17 = arith.constant false
    %22 = vector.broadcast %false_17 : i1 to vector<1x128xi1>
    %c0_i32 = arith.constant 0 : i32
    %23 = vector.broadcast %c0_i32 : i32 to vector<1x128xi32>
    %24 = arith.cmpi sge, %20, %23 : vector<1x128xi32>
    %c10_i32 = arith.constant 10 : i32
    %25 = vector.broadcast %c10_i32 : i32 to vector<1x128xi32>
    %26 = arith.cmpi slt, %20, %25 : vector<1x128xi32>
    %27 = arith.andi %24, %26 : vector<1x128xi1>
    %28 = arith.ori %21, %27 : vector<1x128xi1>
    %c10_i32_18 = arith.constant 10 : i32
    %29 = vector.broadcast %c10_i32_18 : i32 to vector<1x128xi32>
    %30 = arith.cmpi sge, %20, %29 : vector<1x128xi32>
    %c18_i32 = arith.constant 18 : i32
    %31 = vector.broadcast %c18_i32 : i32 to vector<1x128xi32>
    %32 = arith.cmpi slt, %20, %31 : vector<1x128xi32>
    %33 = arith.andi %30, %32 : vector<1x128xi1>
    %34 = arith.ori %28, %33 : vector<1x128xi1>
    %c18_i32_19 = arith.constant 18 : i32
    %35 = vector.broadcast %c18_i32_19 : i32 to vector<1x128xi32>
    %36 = arith.cmpi sge, %20, %35 : vector<1x128xi32>
    %c19_i32 = arith.constant 19 : i32
    %37 = vector.broadcast %c19_i32 : i32 to vector<1x128xi32>
    %38 = arith.cmpi slt, %20, %37 : vector<1x128xi32>
    %39 = arith.andi %36, %38 : vector<1x128xi1>
    %40 = arith.ori %22, %39 : vector<1x128xi1>
    %c19_i32_20 = arith.constant 19 : i32
    %41 = vector.broadcast %c19_i32_20 : i32 to vector<1x128xi32>
    %42 = arith.cmpi sge, %20, %41 : vector<1x128xi32>
    %c25_i32 = arith.constant 25 : i32
    %43 = vector.broadcast %c25_i32 : i32 to vector<1x128xi32>
    %44 = arith.cmpi slt, %20, %43 : vector<1x128xi32>
    %45 = arith.andi %42, %44 : vector<1x128xi1>
    %46 = arith.ori %34, %45 : vector<1x128xi1>
    %c25_i32_21 = arith.constant 25 : i32
    %47 = vector.broadcast %c25_i32_21 : i32 to vector<1x128xi32>
    %48 = arith.cmpi sge, %20, %47 : vector<1x128xi32>
    %c29_i32 = arith.constant 29 : i32
    %49 = vector.broadcast %c29_i32 : i32 to vector<1x128xi32>
    %50 = arith.cmpi slt, %20, %49 : vector<1x128xi32>
    %51 = arith.andi %48, %50 : vector<1x128xi1>
    %52 = arith.ori %40, %51 : vector<1x128xi1>
    %cst_22 = arith.constant 0.000000e+00 : f32
    %53 = vector.broadcast %cst_22 : f32 to vector<8x128xf32>
    %54 = arith.maximumf %19, %53 : vector<8x128xf32>
    %cst_23 = arith.constant 0xFF800000 : f32
    %55 = vector.shape_cast %27 : vector<1x128xi1> to vector<1x128xi1>
    %56 = vector.broadcast %55 : vector<1x128xi1> to vector<8x128xi1>
    %57 = vector.broadcast %cst_23 : f32 to vector<8x128xf32>
    %58 = arith.select %56, %19, %57 : vector<8x128xi1>, vector<8x128xf32>
    %cst_24 = arith.constant dense<0xFF800000> : vector<8xf32>
    %59 = vector.multi_reduction <maximumf>, %58, %cst_24 [1] : vector<8x128xf32> to vector<8xf32>
    %60 = vector.shape_cast %59 : vector<8xf32> to vector<8x1xf32>
    %61 = vector.shape_cast %27 : vector<1x128xi1> to vector<1x128xi1>
    %62 = vector.broadcast %61 : vector<1x128xi1> to vector<8x128xi1>
    %63 = vector.shape_cast %60 : vector<8x1xf32> to vector<8x1xf32>
    %64 = vector.broadcast %63 : vector<8x1xf32> to vector<8x128xf32>
    %65 = arith.select %62, %64, %54 : vector<8x128xi1>, vector<8x128xf32>
    %cst_25 = arith.constant 0xFF800000 : f32
    %66 = vector.shape_cast %33 : vector<1x128xi1> to vector<1x128xi1>
    %67 = vector.broadcast %66 : vector<1x128xi1> to vector<8x128xi1>
    %68 = vector.broadcast %cst_25 : f32 to vector<8x128xf32>
    %69 = arith.select %67, %19, %68 : vector<8x128xi1>, vector<8x128xf32>
    %cst_26 = arith.constant dense<0xFF800000> : vector<8xf32>
    %70 = vector.multi_reduction <maximumf>, %69, %cst_26 [1] : vector<8x128xf32> to vector<8xf32>
    %71 = vector.shape_cast %70 : vector<8xf32> to vector<8x1xf32>
    %72 = vector.shape_cast %33 : vector<1x128xi1> to vector<1x128xi1>
    %73 = vector.broadcast %72 : vector<1x128xi1> to vector<8x128xi1>
    %74 = vector.shape_cast %71 : vector<8x1xf32> to vector<8x1xf32>
    %75 = vector.broadcast %74 : vector<8x1xf32> to vector<8x128xf32>
    %76 = arith.select %73, %75, %65 : vector<8x128xi1>, vector<8x128xf32>
    %cst_27 = arith.constant 0xFF800000 : f32
    %77 = vector.shape_cast %45 : vector<1x128xi1> to vector<1x128xi1>
    %78 = vector.broadcast %77 : vector<1x128xi1> to vector<8x128xi1>
    %79 = vector.broadcast %cst_27 : f32 to vector<8x128xf32>
    %80 = arith.select %78, %19, %79 : vector<8x128xi1>, vector<8x128xf32>
    %cst_28 = arith.constant dense<0xFF800000> : vector<8xf32>
    %81 = vector.multi_reduction <maximumf>, %80, %cst_28 [1] : vector<8x128xf32> to vector<8xf32>
    %82 = vector.shape_cast %81 : vector<8xf32> to vector<8x1xf32>
    %83 = vector.shape_cast %45 : vector<1x128xi1> to vector<1x128xi1>
    %84 = vector.broadcast %83 : vector<1x128xi1> to vector<8x128xi1>
    %85 = vector.shape_cast %82 : vector<8x1xf32> to vector<8x1xf32>
    %86 = vector.broadcast %85 : vector<8x1xf32> to vector<8x128xf32>
    %87 = arith.select %84, %86, %76 : vector<8x128xi1>, vector<8x128xf32>
    %88 = arith.subf %19, %87 : vector<8x128xf32>
    %89 = math.exp %88 : vector<8x128xf32>
    %c0_29 = arith.constant 0 : index
    %c0_30 = arith.constant 0 : index
    %90 = vector.load %arg8[%c0_29, %c0_30] : memref<128x128xf32, #tpu.memory_space<vmem>>, vector<128x128xf32>
    %cst_31 = arith.constant dense<0.000000e+00> : vector<8x128xf32>
    %91 = tpu.matmul %89, %90, %cst_31 {dimension_numbers = #tpu.dot_dimension_numbers<[1], [0], [0], [1], [0, 0, 1, 1], [], []>} : vector<8x128xf32>, vector<128x128xf32>, vector<8x128xf32> -> vector<8x128xf32>
    %92 = tpu.reciprocal %91 {approx = true} : vector<8x128xf32> -> vector<8x128xf32>
    %93 = arith.mulf %91, %92 : vector<8x128xf32>
    %cst_32 = arith.constant 2.000000e+00 : f32
    %94 = vector.broadcast %cst_32 : f32 to vector<8x128xf32>
    %95 = arith.subf %94, %93 : vector<8x128xf32>
    %96 = arith.mulf %92, %95 : vector<8x128xf32>
    %97 = arith.mulf %89, %96 : vector<8x128xf32>
    %cst_33 = arith.constant 5.000000e-01 : f32
    %98 = vector.broadcast %cst_33 : f32 to vector<8x128xf32>
    %99 = arith.mulf %98, %19 : vector<8x128xf32>
    %100 = math.tanh %99 : vector<8x128xf32>
    %cst_34 = arith.constant 1.000000e+00 : f32
    %101 = vector.broadcast %cst_34 : f32 to vector<8x128xf32>
    %102 = arith.addf %100, %101 : vector<8x128xf32>
    %cst_35 = arith.constant 5.000000e-01 : f32
    %103 = vector.broadcast %cst_35 : f32 to vector<8x128xf32>
    %104 = arith.mulf %103, %102 : vector<8x128xf32>
    %cst_36 = arith.constant 0.000000e+00 : f32
    %105 = vector.shape_cast %52 : vector<1x128xi1> to vector<1x128xi1>
    %106 = vector.broadcast %105 : vector<1x128xi1> to vector<8x128xi1>
    %107 = vector.broadcast %cst_36 : f32 to vector<8x128xf32>
    %108 = arith.select %106, %104, %107 : vector<8x128xi1>, vector<8x128xf32>
    %109 = vector.shape_cast %46 : vector<1x128xi1> to vector<1x128xi1>
    %110 = vector.broadcast %109 : vector<1x128xi1> to vector<8x128xi1>
    %111 = arith.select %110, %97, %108 : vector<8x128xi1>, vector<8x128xf32>
    %c0_37 = arith.constant 0 : index
    %c0_38 = arith.constant 0 : index
    %112 = vector.load %arg9[%c0_37, %c0_38] : memref<8x128xf32, #tpu.memory_space<vmem>>, vector<8x128xf32>
    tpu.vector_store %arg9[%c0_37, %c0_38], %111 {strides = array<i32>} : memref<8x128xf32, #tpu.memory_space<vmem>>, vector<8x128xf32>,
    return
  }
  func.func @transform_0(%arg0: i32) -> (i32, i32) {
    %c0_i32 = arith.constant 0 : i32
    %c0_i32_0 = arith.constant 0 : i32
    return %arg0, %c0_i32 : i32, i32
  }
  func.func @transform_1(%arg0: i32) -> (i32, i32) {
    %c0_i32 = arith.constant 0 : i32
    %c0_i32_0 = arith.constant 0 : i32
    %c0_i32_1 = arith.constant 0 : i32
    return %c0_i32, %c0_i32_0 : i32, i32
  }
  func.func @transform_2(%arg0: i32) -> (i32, i32) {
    %c0_i32 = arith.constant 0 : i32
    %c0_i32_0 = arith.constant 0 : i32
    %c0_i32_1 = arith.constant 0 : i32
    return %c0_i32, %c0_i32_0 : i32, i32
  }
  func.func @transform_3(%arg0: i32) -> (i32, i32) {
    %c0_i32 = arith.constant 0 : i32
    %c0_i32_0 = arith.constant 0 : i32
    %c0_i32_1 = arith.constant 0 : i32
    return %c0_i32, %c0_i32_0 : i32, i32
  }
  func.func @transform_4(%arg0: i32) -> (i32, i32) {
    %c0_i32 = arith.constant 0 : i32
    %c0_i32_0 = arith.constant 0 : i32
    %c0_i32_1 = arith.constant 0 : i32
    return %c0_i32, %c0_i32_0 : i32, i32
  }
  func.func @transform_5(%arg0: i32) -> (i32, i32) {
    %c0_i32 = arith.constant 0 : i32
    %c0_i32_0 = arith.constant 0 : i32
    %c0_i32_1 = arith.constant 0 : i32
    return %c0_i32, %c0_i32_0 : i32, i32
  }
  func.func @transform_6(%arg0: i32) -> (i32, i32) {
    %c0_i32 = arith.constant 0 : i32
    %c0_i32_0 = arith.constant 0 : i32
    %c0_i32_1 = arith.constant 0 : i32
    return %c0_i32, %c0_i32_0 : i32, i32
  }
  func.func @transform_7(%arg0: i32) -> (i32, i32) {
    %c0_i32 = arith.constant 0 : i32
    %c0_i32_0 = arith.constant 0 : i32
    %c0_i32_1 = arith.constant 0 : i32
    return %c0_i32, %c0_i32_0 : i32, i32
  }
  func.func @transform_8(%arg0: i32) -> (i32, i32) {
    %c0_i32 = arith.constant 0 : i32
    %c0_i32_0 = arith.constant 0 : i32
    return %arg0, %c0_i32 : i32, i32
  }
}

module attributes {stable_mosaic.version = 11 : i64} {
  func.func @music_kernel(%arg0: i32, %arg1: memref<8x32xf32, #tpu.memory_space<vmem>>, %arg2: memref<32x32xf32, #tpu.memory_space<vmem>>, %arg3: memref<1x32xf32, #tpu.memory_space<vmem>>, %arg4: memref<32x32xf32, #tpu.memory_space<vmem>>, %arg5: memref<1x32xf32, #tpu.memory_space<vmem>>, %arg6: memref<32x128xf32, #tpu.memory_space<vmem>>, %arg7: memref<1x128xf32, #tpu.memory_space<vmem>>, %arg8: memref<128x128xf32, #tpu.memory_space<vmem>>, %arg9: memref<8x128xf32, #tpu.memory_space<vmem>>) attributes {dimension_semantics = [#tpu.dimension_semantics<parallel>], iteration_bounds = array<i64: 1>, scalar_prefetch = 0 : i64, scratch_operands = 0 : i64, tpu.core_type = #tpu.core_type<tc>, window_params = [{transform_indices = @transform_0, window_bounds = array<i64: 8, 32>}, {pipeline_mode = #tpu.pipeline_mode<synchronous>, transform_indices = @transform_1, window_bounds = array<i64: 32, 32>}, {pipeline_mode = #tpu.pipeline_mode<synchronous>, transform_indices = @transform_2, window_bounds = array<i64: 1, 32>}, {pipeline_mode = #tpu.pipeline_mode<synchronous>, transform_indices = @transform_3, window_bounds = array<i64: 32, 32>}, {pipeline_mode = #tpu.pipeline_mode<synchronous>, transform_indices = @transform_4, window_bounds = array<i64: 1, 32>}, {pipeline_mode = #tpu.pipeline_mode<synchronous>, transform_indices = @transform_5, window_bounds = array<i64: 32, 128>}, {pipeline_mode = #tpu.pipeline_mode<synchronous>, transform_indices = @transform_6, window_bounds = array<i64: 1, 128>}, {pipeline_mode = #tpu.pipeline_mode<synchronous>, transform_indices = @transform_7, window_bounds = array<i64: 128, 128>}, {transform_indices = @transform_8, window_bounds = array<i64: 8, 128>}]} {
    %c0 = arith.constant 0 : index
    %c0_0 = arith.constant 0 : index
    %0 = vector.load %arg1[%c0, %c0_0] : memref<8x32xf32, #tpu.memory_space<vmem>>, vector<8x32xf32>
    %c0_1 = arith.constant 0 : index
    %c0_2 = arith.constant 0 : index
    %1 = vector.load %arg2[%c0_1, %c0_2] : memref<32x32xf32, #tpu.memory_space<vmem>>, vector<32x32xf32>
    %cst = arith.constant dense<0.000000e+00> : vector<8x32xf32>
    %2 = tpu.matmul %0, %1, %cst {dimension_numbers = #tpu.dot_dimension_numbers<[1], [0], [0], [1], [0, 0, 1, 1], [], []>} : vector<8x32xf32>, vector<32x32xf32>, vector<8x32xf32> -> vector<8x32xf32>
    %c0_3 = arith.constant 0 : index
    %c0_4 = arith.constant 0 : index
    %3 = vector.load %arg3[%c0_3, %c0_4] : memref<1x32xf32, #tpu.memory_space<vmem>>, vector<1x32xf32>
    %4 = vector.broadcast %3 : vector<1x32xf32> to vector<8x32xf32>
    %5 = arith.addf %2, %4 : vector<8x32xf32>
    %cst_5 = arith.constant 0.000000e+00 : f32
    %6 = vector.broadcast %cst_5 : f32 to vector<8x32xf32>
    %7 = arith.maximumf %5, %6 : vector<8x32xf32>
    %c0_6 = arith.constant 0 : index
    %c0_7 = arith.constant 0 : index
    %8 = vector.load %arg4[%c0_6, %c0_7] : memref<32x32xf32, #tpu.memory_space<vmem>>, vector<32x32xf32>
    %cst_8 = arith.constant dense<0.000000e+00> : vector<8x32xf32>
    %9 = tpu.matmul %7, %8, %cst_8 {dimension_numbers = #tpu.dot_dimension_numbers<[1], [0], [0], [1], [0, 0, 1, 1], [], []>} : vector<8x32xf32>, vector<32x32xf32>, vector<8x32xf32> -> vector<8x32xf32>
    %c0_9 = arith.constant 0 : index
    %c0_10 = arith.constant 0 : index
    %10 = vector.load %arg5[%c0_9, %c0_10] : memref<1x32xf32, #tpu.memory_space<vmem>>, vector<1x32xf32>
    %11 = vector.broadcast %10 : vector<1x32xf32> to vector<8x32xf32>
    %12 = arith.addf %9, %11 : vector<8x32xf32>
    %cst_11 = arith.constant 0.000000e+00 : f32
    %13 = vector.broadcast %cst_11 : f32 to vector<8x32xf32>
    %14 = arith.maximumf %12, %13 : vector<8x32xf32>
    %c0_12 = arith.constant 0 : index
    %c0_13 = arith.constant 0 : index
    %15 = vector.load %arg6[%c0_12, %c0_13] : memref<32x128xf32, #tpu.memory_space<vmem>>, vector<32x128xf32>
    %cst_14 = arith.constant dense<0.000000e+00> : vector<8x128xf32>
    %16 = tpu.matmul %14, %15, %cst_14 {dimension_numbers = #tpu.dot_dimension_numbers<[1], [0], [0], [1], [0, 0, 1, 1], [], []>} : vector<8x32xf32>, vector<32x128xf32>, vector<8x128xf32> -> vector<8x128xf32>
    %c0_15 = arith.constant 0 : index
    %c0_16 = arith.constant 0 : index
    %17 = vector.load %arg7[%c0_15, %c0_16] : memref<1x128xf32, #tpu.memory_space<vmem>>, vector<1x128xf32>
    %18 = vector.broadcast %17 : vector<1x128xf32> to vector<8x128xf32>
    %19 = arith.addf %16, %18 : vector<8x128xf32>
    %20 = tpu.iota {dimensions = array<i32: 1>} : vector<1x128xi32>
    %false = arith.constant false
    %21 = vector.broadcast %false : i1 to vector<1x128xi1>
    %false_17 = arith.constant false
    %22 = vector.broadcast %false_17 : i1 to vector<1x128xi1>
    %c0_i32 = arith.constant 0 : i32
    %23 = vector.broadcast %c0_i32 : i32 to vector<1x128xi32>
    %24 = arith.cmpi sge, %20, %23 : vector<1x128xi32>
    %c10_i32 = arith.constant 10 : i32
    %25 = vector.broadcast %c10_i32 : i32 to vector<1x128xi32>
    %26 = arith.cmpi slt, %20, %25 : vector<1x128xi32>
    %27 = arith.andi %24, %26 : vector<1x128xi1>
    %28 = arith.ori %21, %27 : vector<1x128xi1>
    %c10_i32_18 = arith.constant 10 : i32
    %29 = vector.broadcast %c10_i32_18 : i32 to vector<1x128xi32>
    %30 = arith.cmpi sge, %20, %29 : vector<1x128xi32>
    %c18_i32 = arith.constant 18 : i32
    %31 = vector.broadcast %c18_i32 : i32 to vector<1x128xi32>
    %32 = arith.cmpi slt, %20, %31 : vector<1x128xi32>
    %33 = arith.andi %30, %32 : vector<1x128xi1>
    %34 = arith.ori %28, %33 : vector<1x128xi1>
    %c18_i32_19 = arith.constant 18 : i32
    %35 = vector.broadcast %c18_i32_19 : i32 to vector<1x128xi32>
    %36 = arith.cmpi sge, %20, %35 : vector<1x128xi32>
    %c19_i32 = arith.constant 19 : i32
    %37 = vector.broadcast %c19_i32 : i32 to vector<1x128xi32>
    %38 = arith.cmpi slt, %20, %37 : vector<1x128xi32>
    %39 = arith.andi %36, %38 : vector<1x128xi1>
    %40 = arith.ori %22, %39 : vector<1x128xi1>
    %c19_i32_20 = arith.constant 19 : i32
    %41 = vector.broadcast %c19_i32_20 : i32 to vector<1x128xi32>
    %42 = arith.cmpi sge, %20, %41 : vector<1x128xi32>
    %c25_i32 = arith.constant 25 : i32
    %43 = vector.broadcast %c25_i32 : i32 to vector<1x128xi32>
    %44 = arith.cmpi slt, %20, %43 : vector<1x128xi32>
    %45 = arith.andi %42, %44 : vector<1x128xi1>
    %46 = arith.ori %34, %45 : vector<1x128xi1>
    %c25_i32_21 = arith.constant 25 : i32
    %47 = vector.broadcast %c25_i32_21 : i32 to vector<1x128xi32>
    %48 = arith.cmpi sge, %20, %47 : vector<1x128xi32>
    %c29_i32 = arith.constant 29 : i32
    %49 = vector.broadcast %c29_i32 : i32 to vector<1x128xi32>
    %50 = arith.cmpi slt, %20, %49 : vector<1x128xi32>
    %51 = arith.andi %48, %50 : vector<1x128xi1>
    %52 = arith.ori %40, %51 : vector<1x128xi1>
    %cst_22 = arith.constant 0.000000e+00 : f32
    %53 = vector.broadcast %cst_22 : f32 to vector<8x128xf32>
    %54 = arith.maximumf %19, %53 : vector<8x128xf32>
    %cst_23 = arith.constant 0xFF800000 : f32
    %55 = vector.shape_cast %27 : vector<1x128xi1> to vector<1x128xi1>
    %56 = vector.broadcast %55 : vector<1x128xi1> to vector<8x128xi1>
    %57 = vector.broadcast %cst_23 : f32 to vector<8x128xf32>
    %58 = arith.select %56, %19, %57 : vector<8x128xi1>, vector<8x128xf32>
    %cst_24 = arith.constant dense<0xFF800000> : vector<8xf32>
    %59 = vector.multi_reduction <maximumf>, %58, %cst_24 [1] : vector<8x128xf32> to vector<8xf32>
    %60 = vector.shape_cast %59 : vector<8xf32> to vector<8x1xf32>
    %61 = vector.shape_cast %27 : vector<1x128xi1> to vector<1x128xi1>
    %62 = vector.broadcast %61 : vector<1x128xi1> to vector<8x128xi1>
    %63 = vector.shape_cast %60 : vector<8x1xf32> to vector<8x1xf32>
    %64 = vector.broadcast %63 : vector<8x1xf32> to vector<8x128xf32>
    %65 = arith.select %62, %64, %54 : vector<8x128xi1>, vector<8x128xf32>
    %cst_25 = arith.constant 0xFF800000 : f32
    %66 = vector.shape_cast %33 : vector<1x128xi1> to vector<1x128xi1>
    %67 = vector.broadcast %66 : vector<1x128xi1> to vector<8x128xi1>
    %68 = vector.broadcast %cst_25 : f32 to vector<8x128xf32>
    %69 = arith.select %67, %19, %68 : vector<8x128xi1>, vector<8x128xf32>
    %cst_26 = arith.constant dense<0xFF800000> : vector<8xf32>
    %70 = vector.multi_reduction <maximumf>, %69, %cst_26 [1] : vector<8x128xf32> to vector<8xf32>
    %71 = vector.shape_cast %70 : vector<8xf32> to vector<8x1xf32>
    %72 = vector.shape_cast %33 : vector<1x128xi1> to vector<1x128xi1>
    %73 = vector.broadcast %72 : vector<1x128xi1> to vector<8x128xi1>
    %74 = vector.shape_cast %71 : vector<8x1xf32> to vector<8x1xf32>
    %75 = vector.broadcast %74 : vector<8x1xf32> to vector<8x128xf32>
    %76 = arith.select %73, %75, %65 : vector<8x128xi1>, vector<8x128xf32>
    %cst_27 = arith.constant 0xFF800000 : f32
    %77 = vector.shape_cast %45 : vector<1x128xi1> to vector<1x128xi1>
    %78 = vector.broadcast %77 : vector<1x128xi1> to vector<8x128xi1>
    %79 = vector.broadcast %cst_27 : f32 to vector<8x128xf32>
    %80 = arith.select %78, %19, %79 : vector<8x128xi1>, vector<8x128xf32>
    %cst_28 = arith.constant dense<0xFF800000> : vector<8xf32>
    %81 = vector.multi_reduction <maximumf>, %80, %cst_28 [1] : vector<8x128xf32> to vector<8xf32>
    %82 = vector.shape_cast %81 : vector<8xf32> to vector<8x1xf32>
    %83 = vector.shape_cast %45 : vector<1x128xi1> to vector<1x128xi1>
    %84 = vector.broadcast %83 : vector<1x128xi1> to vector<8x128xi1>
    %85 = vector.shape_cast %82 : vector<8x1xf32> to vector<8x1xf32>
    %86 = vector.broadcast %85 : vector<8x1xf32> to vector<8x128xf32>
    %87 = arith.select %84, %86, %76 : vector<8x128xi1>, vector<8x128xf32>
    %88 = arith.subf %19, %87 : vector<8x128xf32>
    %89 = math.exp %88 : vector<8x128xf32>
    %c0_29 = arith.constant 0 : index
    %c0_30 = arith.constant 0 : index
    %90 = vector.load %arg8[%c0_29, %c0_30] : memref<128x128xf32, #tpu.memory_space<vmem>>, vector<128x128xf32>
    %cst_31 = arith.constant dense<0.000000e+00> : vector<8x128xf32>
    %91 = tpu.matmul %89, %90, %cst_31 {dimension_numbers = #tpu.dot_dimension_numbers<[1], [0], [0], [1], [0, 0, 1, 1], [], []>} : vector<8x128xf32>, vector<128x128xf32>, vector<8x128xf32> -> vector<8x128xf32>
    %92 = tpu.reciprocal %91 {approx = true} : vector<8x128xf32> -> vector<8x128xf32>
    %93 = arith.mulf %91, %92 : vector<8x128xf32>
    %cst_32 = arith.constant 2.000000e+00 : f32
    %94 = vector.broadcast %cst_32 : f32 to vector<8x128xf32>
    %95 = arith.subf %94, %93 : vector<8x128xf32>
    %96 = arith.mulf %92, %95 : vector<8x128xf32>
    %97 = arith.mulf %89, %96 : vector<8x128xf32>
    %cst_33 = arith.constant 5.000000e-01 : f32
    %98 = vector.broadcast %cst_33 : f32 to vector<8x128xf32>
    %99 = arith.mulf %98, %19 : vector<8x128xf32>
    %100 = math.tanh %99 : vector<8x128xf32>
    %cst_34 = arith.constant 1.000000e+00 : f32
    %101 = vector.broadcast %cst_34 : f32 to vector<8x128xf32>
    %102 = arith.addf %100, %101 : vector<8x128xf32>
    %cst_35 = arith.constant 5.000000e-01 : f32
    %103 = vector.broadcast %cst_35 : f32 to vector<8x128xf32>
    %104 = arith.mulf %103, %102 : vector<8x128xf32>
    %cst_36 = arith.constant 0.000000e+00 : f32
    %105 = vector.shape_cast %52 : vector<1x128xi1> to vector<1x128xi1>
    %106 = vector.broadcast %105 : vector<1x128xi1> to vector<8x128xi1>
    %107 = vector.broadcast %cst_36 : f32 to vector<8x128xf32>
    %108 = arith.select %106, %104, %107 : vector<8x128xi1>, vector<8x128xf32>
    %109 = vector.shape_cast %46 : vector<1x128xi1> to vector<1x128xi1>
    %110 = vector.broadcast %109 : vector<1x128xi1> to vector<8x128xi1>
    %111 = arith.select %110, %97, %108 : vector<8x128xi1>, vector<8x128xf32>
    %c0_37 = arith.constant 0 : index
    %c0_38 = arith.constant 0 : index
    %112 = vector.load %arg9[%c0_37, %c0_38] : memref<8x128xf32, #tpu.memory_space<vmem>>, vector<8x128xf32>
    tpu.vector_store %arg9[%c0_37, %c0_38], %111 {strides = array<i32>} : memref<8x128xf32, #tpu.memory_space<vmem>>, vector<8x128xf32>,
    return
  }
  func.func @transform_0(%arg0: i32) -> (i32, i32) {
    %c0_i32 = arith.constant 0 : i32
    %c0_i32_0 = arith.constant 0 : i32
    return %arg0, %c0_i32 : i32, i32
  }
  func.func @transform_1(%arg0: i32) -> (i32, i32) {
    %c0_i32 = arith.constant 0 : i32
    %c0_i32_0 = arith.constant 0 : i32
    %c0_i32_1 = arith.constant 0 : i32
    return %c0_i32, %c0_i32_0 : i32, i32
  }
  func.func @transform_2(%arg0: i32) -> (i32, i32) {
    %c0_i32 = arith.constant 0 : i32
    %c0_i32_0 = arith.constant 0 : i32
    %c0_i32_1 = arith.constant 0 : i32
    return %c0_i32, %c0_i32_0 : i32, i32
  }
  func.func @transform_3(%arg0: i32) -> (i32, i32) {
    %c0_i32 = arith.constant 0 : i32
    %c0_i32_0 = arith.constant 0 : i32
    %c0_i32_1 = arith.constant 0 : i32
    return %c0_i32, %c0_i32_0 : i32, i32
  }
  func.func @transform_4(%arg0: i32) -> (i32, i32) {
    %c0_i32 = arith.constant 0 : i32
    %c0_i32_0 = arith.constant 0 : i32
    %c0_i32_1 = arith.constant 0 : i32
    return %c0_i32, %c0_i32_0 : i32, i32
  }
  func.func @transform_5(%arg0: i32) -> (i32, i32) {
    %c0_i32 = arith.constant 0 : i32
    %c0_i32_0 = arith.constant 0 : i32
    %c0_i32_1 = arith.constant 0 : i32
    return %c0_i32, %c0_i32_0 : i32, i32
  }
  func.func @transform_6(%arg0: i32) -> (i32, i32) {
    %c0_i32 = arith.constant 0 : i32
    %c0_i32_0 = arith.constant 0 : i32
    %c0_i32_1 = arith.constant 0 : i32
    return %c0_i32, %c0_i32_0 : i32, i32
  }
  func.func @transform_7(%arg0: i32) -> (i32, i32) {
    %c0_i32 = arith.constant 0 : i32
    %c0_i32_0 = arith.constant 0 : i32
    %c0_i32_1 = arith.constant 0 : i32
    return %c0_i32, %c0_i32_0 : i32, i32
  }
  func.func @transform_8(%arg0: i32) -> (i32, i32) {
    %c0_i32 = arith.constant 0 : i32
    %c0_i32_0 = arith.constant 0 : i32
    return %arg0, %c0_i32 : i32, i32
  }
}

</mosaic_0001>

<bundles_post_ra>
// kernel: tpu_custom_call.1
= control target key start
LH: loop header
LB: loop body
LE: loop exit
PB: predicated region body
PF: predicated region fallthrough
CT: control target
= control target key end

     0   :  { %13 = vsyncpa [#allocation3], 0  ;;  %s608_s0 = inlined_call_operand.hbm [shape: f32[8,32], index: 0, kind: input, shape index: {}]   ;;  %s609_s1 = inlined_call_operand.hbm [shape: f32[32,32], index: 1, kind: input, shape index: {}]   ;;  %s610_s2 = inlined_call_operand.vmem [shape: f32[1,32], index: 2, kind: input, shape index: {}]   ;;  %s611_s3 = inlined_call_operand.hbm [shape: f32[32,32], index: 3, kind: input, shape index: {}]   ;;  %s612_s4 = inlined_call_operand.vmem [shape: f32[1,32], index: 4, kind: input, shape index: {}]   ;;  %s613_s5 = inlined_call_operand.hbm [shape: f32[32,128], index: 5, kind: input, shape index: {}]   ;;  %s614_s6 = inlined_call_operand.vmem [shape: f32[1,128], index: 6, kind: input, shape index: {}]   ;;  %s615_s7 = inlined_call_operand.hbm [shape: f32[128,128], index: 7, kind: input, shape index: {}]   ;;  %s616_s8 = inlined_call_operand.hbm [shape: f32[8,128], index: 8, kind: output, shape index: {}]  }
   0x1   :  { %14 = vsyncpa [#allocation6], 0 }
   0x2   :  { %15 = vsyncpa [#allocation9], 0  ;;  %s32_s29 = sshll.u32 %s609_s1, 4  ;;  %s33_s29 = int_to_ptr.hbm [resolvable:$true] %s32_s29 }
   0x3   :  { %16 = vsyncpa [#allocation4], 0  ;;  %s488_s30 = smov [#allocation5]   ;;  %s62_s12 = sshll.u32 %s613_s5, 4  ;;  %s63_s12 = int_to_ptr.hbm [resolvable:$true] %s62_s12 }
   0x4   :  { %s34_s9 = sshll.u32 %s488_s30, 4  ;;  %s489_s13 = smov 128   ;;  %s35_s9 = int_to_ptr.vmem [resolvable:$true] %s34_s9 }
   0x5   :  { %s490_s14 = smov 8   ;;  %s491_s15 = smov [#allocation8]  }
   0x6   :  { %40 = dma.hbm_to_vmem [thread:$0]  %s33_s29, 512, %s35_s9, [#allocation6], %s489_s13, %s489_s13, %s490_s14  }
   0x7   :  { %s64_s16 = sshll.u32 %s491_s15, 4  ;;  %s22_s19 = sshll.u32 %s608_s0, 4  ;;  %s65_s16 = int_to_ptr.vmem [resolvable:$true] %s64_s16  ;;  %s23_s19 = int_to_ptr.hbm [resolvable:$true] %s22_s19 }
   0x8   :  { %70 = dma.hbm_to_vmem [thread:$0]  %s63_s12, 512, %s65_s16, [#allocation9], %s489_s13, %s489_s13, %s490_s14  }
   0x9   :  { %s47_s21 = sshll.u32 %s611_s3, 4  ;;  %s492_s22 = smov [#allocation2]   ;;  %s48_s21 = int_to_ptr.hbm [resolvable:$true] %s47_s21 }
   0xa   :  { %s24_s23 = sshll.u32 %s492_s22, 4  ;;  %s493_s5 = smov [#allocation7]   ;;  %s25_s23 = int_to_ptr.vmem [resolvable:$true] %s24_s23 }
   0xb   :  { %27 = dma.hbm_to_vmem [thread:$0]  %s23_s19, 128, %s25_s23, [#allocation3]  }
   0xc   :  { %s49_s24 = sshll.u32 %s493_s5, 4  ;;  %s77_s27 = sshll.u32 %s615_s7, 4  ;;  %s50_s24 = int_to_ptr.vmem [resolvable:$true] %s49_s24  ;;  %s78_s27 = int_to_ptr.hbm [resolvable:$true] %s77_s27 }
   0xd   :  { %55 = dma.hbm_to_vmem [thread:$0]  %s48_s21, 512, %s50_s24, [#allocation6], %s489_s13, %s489_s13, %s490_s14  }
   0xe   :  { %s494_s0 = smov [#allocation10]  }
   0xf   :  { %s79_s28 = sshll.u32 %s494_s0, 4  ;;  %s80_s28 = int_to_ptr.vmem [resolvable:$true] %s79_s28 }
  0x10   :  { %85 = dma.hbm_to_vmem [thread:$0]  %s78_s27, 2048, %s80_s28, [#allocation9], %s489_s13, %s489_s13, %s490_s14  }
  0x11   :  { %480 = dma.done.wait [#allocation3], 128  }
  0x12   :  { %481 = vsyncadd [#allocation3], 4294967168 }
  0x13   :  { %482 = dma.done.wait [#allocation6], 1024  }
  0x14   :  { %483 = vsyncadd [#allocation6], 4294966272 }
  0x15   :  { %484 = dma.done.wait [#allocation9], 2560  }
  0x16   :  { %485 = vsyncadd [#allocation9], 4294964736  ;;  %v110_v0 = vld [vmem:[#allocation5 + $0x18] sm:$0xff]  ;;  %v109_v1 = vld [vmem:[#allocation5 + $0x10] sm:$0xff]  ;;  %vm115_vm0 = vcmask 261120   ;;  %v203_v26 = vlaneseq  ;;  %s304_s12 = sshll.u32 %s616_s8, 4  ;;  %s305_s12 = int_to_ptr.hbm [resolvable:$true] %s304_s12 }
  0x17   :  { %131 = vmatpush.msra.mxu0 %v110_v0  ;;  %v143_v2 = vld [vmem:[#allocation7 + $0x18] sm:$0xff]  ;;  %v108_v3 = vld [vmem:[#allocation5 + $0x8] sm:$0xff]  ;;  %v107_v4 = vld [vmem:[#allocation5] sm:$0xff] }
  0x18   :  { %163 = vmatpush.msra.mxu1 %v143_v2  ;;  %v106_v5 = vld [vmem:[#allocation2] sm:$0xff]  ;;  %v142_v6 = vld [vmem:[#allocation7 + $0x10] sm:$0xff]  ;;  %v141_v7 = vld [vmem:[#allocation7 + $0x8] sm:$0xff]  ;;  %v565_v27 = vand.u32 127, %v203_v26 }
  0x19   :  { %132 = vmatpush.msra.mxu0 %v109_v1  ;;  %v140_v8 = vld [vmem:[#allocation7] sm:$0xff]  ;;  %v175_v9 = vld [vmem:[#allocation8 + $0x18] sm:$0xff]  ;;  %v174_v14 = vld [vmem:[#allocation8 + $0x10] sm:$0xff] }
  0x1a   :  { %164 = vmatpush.msra.mxu1 %v142_v6  ;;  %195 = vmatpush.msra.mxu2 %v175_v9  ;;  %v327_v10 = vld [vmem:[%s610_s2] ss:$0 sm:$0xff]  ;;  %v173_v15 = vld [vmem:[#allocation8 + $0x8] sm:$0xff]  ;;  %v172_v16 = vld [vmem:[#allocation8] sm:$0xff]  ;;  %vm215_vm1 = vcmp.ge.s32.totalorder %v565_v27, 19  ;;  %vm216_vm2 = vcmp.lt.s32.totalorder %v565_v27, 25 }
  0x1b   :  { %133 = vmatpush.msra.mxu0 %v108_v3  ;;  %v328_v17 = vld [vmem:[%s612_s4] ss:$0 sm:$0xff]  ;;  %v259_v22 = vld [vmem:[#allocation10 + $0x70] sm:$0xff]  ;;  %v258_v23 = vld [vmem:[#allocation10 + $0x68] sm:$0xff]  ;;  %vm206_vm4 = vcmp.lt.s32.totalorder %v565_v27, 10  ;;  %vm208_vm5 = vcmp.ge.s32.totalorder %v565_v27, 10 }
  0x1c   :  { %165 = vmatpush.msra.mxu1 %v141_v7  ;;  %196 = vmatpush.msra.mxu2 %v174_v14  ;;  %v260_v21 = vld [vmem:[#allocation10 + $0x78] sm:$0xff]  ;;  %v257_v24 = vld [vmem:[#allocation10 + $0x60] sm:$0xff]  ;;  %vm572_vm3 = vmand %vm215_vm1, %vm216_vm2  ;;  %vm209_vm6 = vcmp.lt.s32.totalorder %v565_v27, 18  ;;  %vm212_vm8 = vcmp.ge.s32.totalorder %v565_v27, 18  ;;  %vm213_vm9 = vcmp.lt.s32.totalorder %v565_v27, 19  ;;  %vm219_vm10 = vcmp.ge.s32.totalorder %v565_v27, 25 }
  0x1d   :  { %134 = vmatpush.msra.mxu0 %v107_v4  ;;  %261 = vmatpush.msra.mxu3 %v260_v21  ;;  %v256_v25 = vld [vmem:[#allocation10 + $0x58] sm:$0xff]  ;;  %vm583_vm7 = vmand %vm208_vm5, %vm209_vm6  ;;  %v255_v36 = vld [vmem:[#allocation10 + $0x50] sm:$0xff]  ;;  %vm220_vm11 = vcmp.lt.s32.totalorder %v565_v27, 29 }
  0x1e   :  { %316 = vmatmul.msk.f32.vlgmr.msra.gmra.mxu0 %vm115_vm0, %v106_v5  ;;  %166 = vmatpush.msra.mxu1 %v140_v8  ;;  %v329_v28 = vld [vmem:[%s614_s6] ss:$0 sm:$0xff]  ;;  %v254_v37 = vld [vmem:[#allocation10 + $0x48] sm:$0xff]  ;;  %v253_v38 = vld [vmem:[#allocation10 + $0x40] sm:$0xff]  ;;  %s495_s6 = smov [#allocation11]  }
  0x1f   :  { %197 = vmatpush.msra.mxu2 %v173_v15  ;;  %262 = vmatpush.msra.mxu3 %v259_v22  ;;  %v252_v39 = vld [vmem:[#allocation10 + $0x38] sm:$0xff]  ;;  %v251_v40 = vld [vmem:[#allocation10 + $0x30] sm:$0xff]  ;;  %v250_v41 = vld [vmem:[#allocation10 + $0x28] sm:$0xff]  ;;  %s302_s9 = sshll.u32 %s495_s6, 4  ;;  %s303_s9 = int_to_ptr.vmem [resolvable:$true] %s302_s9 }
  0x20   :  { %v249_v42 = vld [vmem:[#allocation10 + $0x20] sm:$0xff]  ;;  %v248_v43 = vld [vmem:[#allocation10 + $0x18] sm:$0xff]  ;;  %v247_v44 = vld [vmem:[#allocation10 + $0x10] sm:$0xff] }
  0x21   :  { %198 = vmatpush.msra.mxu2 %v172_v16  ;;  %263 = vmatpush.msra.mxu3 %v258_v23  ;;  %v246_v45 = vld [vmem:[#allocation10 + $0x8] sm:$0xff]  ;;  %v245_v46 = vld [vmem:[#allocation10] sm:$0xff]  ;;  %vm214_vm12 = vmand %vm212_vm8, %vm213_vm9 }
  0x22   :  { %vm221_vm13 = vmand %vm219_vm10, %vm220_vm11 }
  0x23   :  { %264 = vmatpush.msra.mxu3 %v257_v24  ;;  %vm211_vm14 = vmor %vm206_vm4, %vm583_vm7 }
  0x24   :  { %vm222_vm15 = vmor %vm214_vm12, %vm221_vm13 }
  0x25   :  { %265 = vmatpush.msra.mxu3 %v256_v25 }
  0x27   :  { %266 = vmatpush.msra.mxu3 %v255_v36 }
  0x29   :  { %267 = vmatpush.msra.mxu3 %v254_v37 }
  0x2b   :  { %268 = vmatpush.msra.mxu3 %v253_v38 }
  0x2d   :  { %269 = vmatpush.msra.mxu3 %v252_v39 }
  0x2f   :  { %270 = vmatpush.msra.mxu3 %v251_v40 }
  0x31   :  { %271 = vmatpush.msra.mxu3 %v250_v41 }
  0x33   :  { %272 = vmatpush.msra.mxu3 %v249_v42 }
  0x35   :  { %273 = vmatpush.msra.mxu3 %v248_v43 }
  0x37   :  { %274 = vmatpush.msra.mxu3 %v247_v44 }
  0x39   :  { %275 = vmatpush.msra.mxu3 %v246_v45 }
  0x3b   :  { %276 = vmatpush.msra.mxu3 %v245_v46 }
  0x9b   :  { %v136_v11 = vpop.f32.mrf.mxu0 }
  0x9c   :  { %v137_v12 = vadd.f32 %v327_v10, %v136_v11 }
  0x9e   :  { %v139_v13 = vmax.f32 %v137_v12, 0.0 }
  0xa0   :  { %317 = vmatmul.msk.f32.vlgmr.msra.gmra.mxu1 %vm115_vm0, %v139_v13 }
 0x11d   :  { %v168_v18 = vpop.f32.mrf.mxu1 }
 0x11e   :  { %v169_v19 = vadd.f32 %v328_v17, %v168_v18 }
 0x120   :  { %v171_v20 = vmax.f32 %v169_v19, 0.0 }
 0x122   :  { %318 = vmatmul.msk.f32.vlgmr.msra.gmra.mxu2 %vm115_vm0, %v171_v20  ;;  %vm218_vm0 = vmor %vm211_vm14, %vm572_vm3 }
 0x1a5   :  { %v200_v29 = vpop.f32.mrf.mxu2 }
 0x1a6   :  { %v201_v31 = vadd.f32 %v329_v28, %v200_v29 }
 0x1a8   :  { %v238_v32 = vsel %vm572_vm3, %v201_v31, -inf  ;;  %v226_v33 = vsel %vm206_vm4, %v201_v31, -inf  ;;  %v232_v35 = vsel %vm583_vm7, %v201_v31, -inf  ;;  %v223_v48 = vmax.f32 %v201_v31, 0.0 }
 0x1a9   :  { %239 = vmax.xlane.f32.xlu1 %v238_v32  ;;  %227 = vmax.xlane.f32.xlu0 %v226_v33  ;;  %v286_v57 = vmul.f32 0.5, %v201_v31 }
 0x1b1   :  { %233 = vmax.xlane.f32.xlu0 %v232_v35 }
 0x21c   :  { %v228_v47 = vpop.xlane.xlu0 %227  ;;  %v240_v51 = vpop.xlane.xlu1 %239 }
 0x21d   :  { %v229_v49 = vsel %vm206_vm4, %v228_v47, %v223_v48 }
 0x224   :  { %v234_v50 = vpop.xlane.xlu0 %233 }
 0x225   :  { %v235_v52 = vsel %vm583_vm7, %v234_v50, %v229_v49 }
 0x226   :  { %v241_v53 = vsel %vm572_vm3, %v240_v51, %v235_v52 }
 0x227   :  { %v242_v54 = vsub.f32 %v201_v31, %v241_v53 }
 0x229   :  { %v243_v55 = vmul.f32 1.442695, %v242_v54 }
 0x22b   :  { %330 = vpow2.f32 %v243_v55 }
 0x22c   :  { %332 = vtanh.f32 %v286_v57 }
 0x231   :  { %v331_v56 = vpop.eup %330 }
 0x232   :  { %277 = vmatmul.f32.vlgmr.msra.gmra.mxu3 %v331_v56  ;;  %v333_v59 = vpop.eup %332 }
 0x233   :  { %v288_v61 = vadd.f32 1.0, %v333_v59 }
 0x235   :  { %v289_v0 = vmul.f32 0.5, %v288_v61 }
 0x237   :  { %v292_v3 = vsel %vm222_vm15, %v289_v0, 0.0 }
 0x2b5   :  { %v278_v58 = vpop.f32.mrf.mxu3 }
 0x2b6   :  { %334 = vrcp.f32 %v278_v58 }
 0x2bc   :  { %v335_v60 = vpop.eup %334 }
 0x2bd   :  { %v282_v62 = vmul.f32 %v335_v60, %v278_v58 }
 0x2bf   :  { %v283_v63 = vsub.f32 2.0, %v282_v62 }
 0x2c1   :  { %v284_v1 = vmul.f32 %v335_v60, %v283_v63 }
 0x2c3   :  { %v285_v2 = vmul.f32 %v331_v56, %v284_v1 }
 0x2c5   :  { %v295_v4 = vsel %vm218_vm0, %v285_v2, %v292_v3 }
 0x2c6   :  { %296 = vst [vmem:[#allocation11] sm:$0xff] %v295_v4 }
 0x2c7   :  { %307 = dma.vmem_to_hbm [thread:$0]  %s303_s9, 128, %s305_s12, [#allocation4]  }
 0x2c8   :  { %486 = dma.done.wait [#allocation4], 128  }
 0x2c9   :  { %487 = vsyncadd [#allocation4], 4294967168 }
 0x2ca   :  { %312 = vsyncpa [#allocation3], 1 }
 0x2cb   :  { %313 = vsyncpa [#allocation6], 1 }
 0x2cc   :  { %314 = vsyncpa [#allocation9], 1 }
 0x2cd   :  { %315 = vsyncpa [#allocation4], 1 }

// kernel: tpu_custom_call.1
= control target key start
LH: loop header
LB: loop body
LE: loop exit
PB: predicated region body
PF: predicated region fallthrough
CT: control target
= control target key end

     0   :  { %13 = vsyncpa [#allocation3], 0  ;;  %s608_s0 = inlined_call_operand.hbm [shape: f32[8,32], index: 0, kind: input, shape index: {}]   ;;  %s609_s1 = inlined_call_operand.hbm [shape: f32[32,32], index: 1, kind: input, shape index: {}]   ;;  %s610_s2 = inlined_call_operand.vmem [shape: f32[1,32], index: 2, kind: input, shape index: {}]   ;;  %s611_s3 = inlined_call_operand.hbm [shape: f32[32,32], index: 3, kind: input, shape index: {}]   ;;  %s612_s4 = inlined_call_operand.vmem [shape: f32[1,32], index: 4, kind: input, shape index: {}]   ;;  %s613_s5 = inlined_call_operand.hbm [shape: f32[32,128], index: 5, kind: input, shape index: {}]   ;;  %s614_s6 = inlined_call_operand.vmem [shape: f32[1,128], index: 6, kind: input, shape index: {}]   ;;  %s615_s7 = inlined_call_operand.hbm [shape: f32[128,128], index: 7, kind: input, shape index: {}]   ;;  %s616_s8 = inlined_call_operand.hbm [shape: f32[8,128], index: 8, kind: output, shape index: {}]  }
   0x1   :  { %14 = vsyncpa [#allocation6], 0 }
   0x2   :  { %15 = vsyncpa [#allocation9], 0  ;;  %s32_s29 = sshll.u32 %s609_s1, 4  ;;  %s33_s29 = int_to_ptr.hbm [resolvable:$true] %s32_s29 }
   0x3   :  { %16 = vsyncpa [#allocation4], 0  ;;  %s488_s30 = smov [#allocation5]   ;;  %s62_s12 = sshll.u32 %s613_s5, 4  ;;  %s63_s12 = int_to_ptr.hbm [resolvable:$true] %s62_s12 }
   0x4   :  { %s34_s9 = sshll.u32 %s488_s30, 4  ;;  %s489_s13 = smov 128   ;;  %s35_s9 = int_to_ptr.vmem [resolvable:$true] %s34_s9 }
   0x5   :  { %s490_s14 = smov 8   ;;  %s491_s15 = smov [#allocation8]  }
   0x6   :  { %40 = dma.hbm_to_vmem [thread:$0]  %s33_s29, 512, %s35_s9, [#allocation6], %s489_s13, %s489_s13, %s490_s14  }
   0x7   :  { %s64_s16 = sshll.u32 %s491_s15, 4  ;;  %s22_s19 = sshll.u32 %s608_s0, 4  ;;  %s65_s16 = int_to_ptr.vmem [resolvable:$true] %s64_s16  ;;  %s23_s19 = int_to_ptr.hbm [resolvable:$true] %s22_s19 }
   0x8   :  { %70 = dma.hbm_to_vmem [thread:$0]  %s63_s12, 512, %s65_s16, [#allocation9], %s489_s13, %s489_s13, %s490_s14  }
   0x9   :  { %s47_s21 = sshll.u32 %s611_s3, 4  ;;  %s492_s22 = smov [#allocation2]   ;;  %s48_s21 = int_to_ptr.hbm [resolvable:$true] %s47_s21 }
   0xa   :  { %s24_s23 = sshll.u32 %s492_s22, 4  ;;  %s493_s5 = smov [#allocation7]   ;;  %s25_s23 = int_to_ptr.vmem [resolvable:$true] %s24_s23 }
   0xb   :  { %27 = dma.hbm_to_vmem [thread:$0]  %s23_s19, 128, %s25_s23, [#allocation3]  }
   0xc   :  { %s49_s24 = sshll.u32 %s493_s5, 4  ;;  %s77_s27 = sshll.u32 %s615_s7, 4  ;;  %s50_s24 = int_to_ptr.vmem [resolvable:$true] %s49_s24  ;;  %s78_s27 = int_to_ptr.hbm [resolvable:$true] %s77_s27 }
   0xd   :  { %55 = dma.hbm_to_vmem [thread:$0]  %s48_s21, 512, %s50_s24, [#allocation6], %s489_s13, %s489_s13, %s490_s14  }
   0xe   :  { %s494_s0 = smov [#allocation10]  }
   0xf   :  { %s79_s28 = sshll.u32 %s494_s0, 4  ;;  %s80_s28 = int_to_ptr.vmem [resolvable:$true] %s79_s28 }
  0x10   :  { %85 = dma.hbm_to_vmem [thread:$0]  %s78_s27, 2048, %s80_s28, [#allocation9], %s489_s13, %s489_s13, %s490_s14  }
  0x11   :  { %480 = dma.done.wait [#allocation3], 128  }
  0x12   :  { %481 = vsyncadd [#allocation3], 4294967168 }
  0x13   :  { %482 = dma.done.wait [#allocation6], 1024  }
  0x14   :  { %483 = vsyncadd [#allocation6], 4294966272 }
  0x15   :  { %484 = dma.done.wait [#allocation9], 2560  }
  0x16   :  { %485 = vsyncadd [#allocation9], 4294964736  ;;  %v110_v0 = vld [vmem:[#allocation5 + $0x18] sm:$0xff]  ;;  %v109_v1 = vld [vmem:[#allocation5 + $0x10] sm:$0xff]  ;;  %vm115_vm0 = vcmask 261120   ;;  %v203_v26 = vlaneseq  ;;  %s304_s12 = sshll.u32 %s616_s8, 4  ;;  %s305_s12 = int_to_ptr.hbm [resolvable:$true] %s304_s12 }
  0x17   :  { %131 = vmatpush.msra.mxu0 %v110_v0  ;;  %v143_v2 = vld [vmem:[#allocation7 + $0x18] sm:$0xff]  ;;  %v108_v3 = vld [vmem:[#allocation5 + $0x8] sm:$0xff]  ;;  %v107_v4 = vld [vmem:[#allocation5] sm:$0xff] }
  0x18   :  { %163 = vmatpush.msra.mxu1 %v143_v2  ;;  %v106_v5 = vld [vmem:[#allocation2] sm:$0xff]  ;;  %v142_v6 = vld [vmem:[#allocation7 + $0x10] sm:$0xff]  ;;  %v141_v7 = vld [vmem:[#allocation7 + $0x8] sm:$0xff]  ;;  %v565_v27 = vand.u32 127, %v203_v26 }
  0x19   :  { %132 = vmatpush.msra.mxu0 %v109_v1  ;;  %v140_v8 = vld [vmem:[#allocation7] sm:$0xff]  ;;  %v175_v9 = vld [vmem:[#allocation8 + $0x18] sm:$0xff]  ;;  %v174_v14 = vld [vmem:[#allocation8 + $0x10] sm:$0xff] }
  0x1a   :  { %164 = vmatpush.msra.mxu1 %v142_v6  ;;  %195 = vmatpush.msra.mxu2 %v175_v9  ;;  %v327_v10 = vld [vmem:[%s610_s2] ss:$0 sm:$0xff]  ;;  %v173_v15 = vld [vmem:[#allocation8 + $0x8] sm:$0xff]  ;;  %v172_v16 = vld [vmem:[#allocation8] sm:$0xff]  ;;  %vm215_vm1 = vcmp.ge.s32.totalorder %v565_v27, 19  ;;  %vm216_vm2 = vcmp.lt.s32.totalorder %v565_v27, 25 }
  0x1b   :  { %133 = vmatpush.msra.mxu0 %v108_v3  ;;  %v328_v17 = vld [vmem:[%s612_s4] ss:$0 sm:$0xff]  ;;  %v259_v22 = vld [vmem:[#allocation10 + $0x70] sm:$0xff]  ;;  %v258_v23 = vld [vmem:[#allocation10 + $0x68] sm:$0xff]  ;;  %vm206_vm4 = vcmp.lt.s32.totalorder %v565_v27, 10  ;;  %vm208_vm5 = vcmp.ge.s32.totalorder %v565_v27, 10 }
  0x1c   :  { %165 = vmatpush.msra.mxu1 %v141_v7  ;;  %196 = vmatpush.msra.mxu2 %v174_v14  ;;  %v260_v21 = vld [vmem:[#allocation10 + $0x78] sm:$0xff]  ;;  %v257_v24 = vld [vmem:[#allocation10 + $0x60] sm:$0xff]  ;;  %vm572_vm3 = vmand %vm215_vm1, %vm216_vm2  ;;  %vm209_vm6 = vcmp.lt.s32.totalorder %v565_v27, 18  ;;  %vm212_vm8 = vcmp.ge.s32.totalorder %v565_v27, 18  ;;  %vm213_vm9 = vcmp.lt.s32.totalorder %v565_v27, 19  ;;  %vm219_vm10 = vcmp.ge.s32.totalorder %v565_v27, 25 }
  0x1d   :  { %134 = vmatpush.msra.mxu0 %v107_v4  ;;  %261 = vmatpush.msra.mxu3 %v260_v21  ;;  %v256_v25 = vld [vmem:[#allocation10 + $0x58] sm:$0xff]  ;;  %vm583_vm7 = vmand %vm208_vm5, %vm209_vm6  ;;  %v255_v36 = vld [vmem:[#allocation10 + $0x50] sm:$0xff]  ;;  %vm220_vm11 = vcmp.lt.s32.totalorder %v565_v27, 29 }
  0x1e   :  { %316 = vmatmul.msk.f32.vlgmr.msra.gmra.mxu0 %vm115_vm0, %v106_v5  ;;  %166 = vmatpush.msra.mxu1 %v140_v8  ;;  %v329_v28 = vld [vmem:[%s614_s6] ss:$0 sm:$0xff]  ;;  %v254_v37 = vld [vmem:[#allocation10 + $0x48] sm:$0xff]  ;;  %v253_v38 = vld [vmem:[#allocation10 + $0x40] sm:$0xff]  ;;  %s495_s6 = smov [#allocation11]  }
  0x1f   :  { %197 = vmatpush.msra.mxu2 %v173_v15  ;;  %262 = vmatpush.msra.mxu3 %v259_v22  ;;  %v252_v39 = vld [vmem:[#allocation10 + $0x38] sm:$0xff]  ;;  %v251_v40 = vld [vmem:[#allocation10 + $0x30] sm:$0xff]  ;;  %v250_v41 = vld [vmem:[#allocation10 + $0x28] sm:$0xff]  ;;  %s302_s9 = sshll.u32 %s495_s6, 4  ;;  %s303_s9 = int_to_ptr.vmem [resolvable:$true] %s302_s9 }
  0x20   :  { %v249_v42 = vld [vmem:[#allocation10 + $0x20] sm:$0xff]  ;;  %v248_v43 = vld [vmem:[#allocation10 + $0x18] sm:$0xff]  ;;  %v247_v44 = vld [vmem:[#allocation10 + $0x10] sm:$0xff] }
  0x21   :  { %198 = vmatpush.msra.mxu2 %v172_v16  ;;  %263 = vmatpush.msra.mxu3 %v258_v23  ;;  %v246_v45 = vld [vmem:[#allocation10 + $0x8] sm:$0xff]  ;;  %v245_v46 = vld [vmem:[#allocation10] sm:$0xff]  ;;  %vm214_vm12 = vmand %vm212_vm8, %vm213_vm9 }
  0x22   :  { %vm221_vm13 = vmand %vm219_vm10, %vm220_vm11 }
  0x23   :  { %264 = vmatpush.msra.mxu3 %v257_v24  ;;  %vm211_vm14 = vmor %vm206_vm4, %vm583_vm7 }
  0x24   :  { %vm222_vm15 = vmor %vm214_vm12, %vm221_vm13 }
  0x25   :  { %265 = vmatpush.msra.mxu3 %v256_v25 }
  0x27   :  { %266 = vmatpush.msra.mxu3 %v255_v36 }
  0x29   :  { %267 = vmatpush.msra.mxu3 %v254_v37 }
  0x2b   :  { %268 = vmatpush.msra.mxu3 %v253_v38 }
  0x2d   :  { %269 = vmatpush.msra.mxu3 %v252_v39 }
  0x2f   :  { %270 = vmatpush.msra.mxu3 %v251_v40 }
  0x31   :  { %271 = vmatpush.msra.mxu3 %v250_v41 }
  0x33   :  { %272 = vmatpush.msra.mxu3 %v249_v42 }
  0x35   :  { %273 = vmatpush.msra.mxu3 %v248_v43 }
  0x37   :  { %274 = vmatpush.msra.mxu3 %v247_v44 }
  0x39   :  { %275 = vmatpush.msra.mxu3 %v246_v45 }
  0x3b   :  { %276 = vmatpush.msra.mxu3 %v245_v46 }
  0x9b   :  { %v136_v11 = vpop.f32.mrf.mxu0 }
  0x9c   :  { %v137_v12 = vadd.f32 %v327_v10, %v136_v11 }
  0x9e   :  { %v139_v13 = vmax.f32 %v137_v12, 0.0 }
  0xa0   :  { %317 = vmatmul.msk.f32.vlgmr.msra.gmra.mxu1 %vm115_vm0, %v139_v13 }
 0x11d   :  { %v168_v18 = vpop.f32.mrf.mxu1 }
 0x11e   :  { %v169_v19 = vadd.f32 %v328_v17, %v168_v18 }
 0x120   :  { %v171_v20 = vmax.f32 %v169_v19, 0.0 }
 0x122   :  { %318 = vmatmul.msk.f32.vlgmr.msra.gmra.mxu2 %vm115_vm0, %v171_v20  ;;  %vm218_vm0 = vmor %vm211_vm14, %vm572_vm3 }
 0x1a5   :  { %v200_v29 = vpop.f32.mrf.mxu2 }
 0x1a6   :  { %v201_v31 = vadd.f32 %v329_v28, %v200_v29 }
 0x1a8   :  { %v238_v32 = vsel %vm572_vm3, %v201_v31, -inf  ;;  %v226_v33 = vsel %vm206_vm4, %v201_v31, -inf  ;;  %v232_v35 = vsel %vm583_vm7, %v201_v31, -inf  ;;  %v223_v48 = vmax.f32 %v201_v31, 0.0 }
 0x1a9   :  { %239 = vmax.xlane.f32.xlu1 %v238_v32  ;;  %227 = vmax.xlane.f32.xlu0 %v226_v33  ;;  %v286_v57 = vmul.f32 0.5, %v201_v31 }
 0x1b1   :  { %233 = vmax.xlane.f32.xlu0 %v232_v35 }
 0x21c   :  { %v228_v47 = vpop.xlane.xlu0 %227  ;;  %v240_v51 = vpop.xlane.xlu1 %239 }
 0x21d   :  { %v229_v49 = vsel %vm206_vm4, %v228_v47, %v223_v48 }
 0x224   :  { %v234_v50 = vpop.xlane.xlu0 %233 }
 0x225   :  { %v235_v52 = vsel %vm583_vm7, %v234_v50, %v229_v49 }
 0x226   :  { %v241_v53 = vsel %vm572_vm3, %v240_v51, %v235_v52 }
 0x227   :  { %v242_v54 = vsub.f32 %v201_v31, %v241_v53 }
 0x229   :  { %v243_v55 = vmul.f32 1.442695, %v242_v54 }
 0x22b   :  { %330 = vpow2.f32 %v243_v55 }
 0x22c   :  { %332 = vtanh.f32 %v286_v57 }
 0x231   :  { %v331_v56 = vpop.eup %330 }
 0x232   :  { %277 = vmatmul.f32.vlgmr.msra.gmra.mxu3 %v331_v56  ;;  %v333_v59 = vpop.eup %332 }
 0x233   :  { %v288_v61 = vadd.f32 1.0, %v333_v59 }
 0x235   :  { %v289_v0 = vmul.f32 0.5, %v288_v61 }
 0x237   :  { %v292_v3 = vsel %vm222_vm15, %v289_v0, 0.0 }
 0x2b5   :  { %v278_v58 = vpop.f32.mrf.mxu3 }
 0x2b6   :  { %334 = vrcp.f32 %v278_v58 }
 0x2bc   :  { %v335_v60 = vpop.eup %334 }
 0x2bd   :  { %v282_v62 = vmul.f32 %v335_v60, %v278_v58 }
 0x2bf   :  { %v283_v63 = vsub.f32 2.0, %v282_v62 }
 0x2c1   :  { %v284_v1 = vmul.f32 %v335_v60, %v283_v63 }
 0x2c3   :  { %v285_v2 = vmul.f32 %v331_v56, %v284_v1 }
 0x2c5   :  { %v295_v4 = vsel %vm218_vm0, %v285_v2, %v292_v3 }
 0x2c6   :  { %296 = vst [vmem:[#allocation11] sm:$0xff] %v295_v4 }
 0x2c7   :  { %307 = dma.vmem_to_hbm [thread:$0]  %s303_s9, 128, %s305_s12, [#allocation4]  }
 0x2c8   :  { %486 = dma.done.wait [#allocation4], 128  }
 0x2c9   :  { %487 = vsyncadd [#allocation4], 4294967168 }
 0x2ca   :  { %312 = vsyncpa [#allocation3], 1 }
 0x2cb   :  { %313 = vsyncpa [#allocation6], 1 }
 0x2cc   :  { %314 = vsyncpa [#allocation9], 1 }
 0x2cd   :  { %315 = vsyncpa [#allocation4], 1 }

</bundles_post_ra>
